<compile_context>
chip_gen: v6e
topology: v6e:2x2x1
jax: 0.10.0
libtpu: 0.0.40
codegen_flags: <defaults>
</compile_context>

<pallas_src>
import functools

import jax
import jax.numpy as jnp
from jax.experimental import pallas as pl
from jax.experimental.pallas import tpu as pltpu

LN_EPS = 1e-5          # PyTorch nn.LayerNorm default
H1, H2, H3 = 128, 128, 64


def _round_up(x, m):
    return ((x + m - 1) // m) * m


def _ln_relu(h, gamma, beta):
    """LayerNorm over last dim (biased variance, like PyTorch) + ReLU.

    Single pass over h: mean and E[h^2] from two reductions; var clamped >= 0.
    """
    inv_w = 1.0 / h.shape[-1]
    s = jnp.sum(h, axis=-1, keepdims=True)
    s2 = jnp.sum(h * h, axis=-1, keepdims=True)
    mu = s * inv_w
    var = jnp.maximum(s2 * inv_w - mu * mu, 0.0)
    hn = (h - mu) * jax.lax.rsqrt(var + LN_EPS)
    return jnp.maximum(hn * gamma + beta, 0.0)


def dqn_kernel(x_ref,
               w1_ref, a1_ref,
               w2_ref, a2_ref,
               w3_ref, a3_ref,
               w4_ref, b4_ref,
               out_ref):
    wdt = w1_ref.dtype  # f32, or bf16 (default) for the MXU fast path

    # Hoist the small packed params once, in f32 (rows: bias, gamma, beta).
    a1 = a1_ref[...].astype(jnp.float32)
    a2 = a2_ref[...].astype(jnp.float32)
    a3 = a3_ref[...].astype(jnp.float32)
    b4 = b4_ref[...].astype(jnp.float32)

    x = x_ref[...]

    h = jnp.dot(x.astype(wdt), w1_ref[...], preferred_element_type=jnp.float32)
    h = _ln_relu(h + a1[0:1], a1[1:2], a1[2:3])

    h = jnp.dot(h.astype(wdt), w2_ref[...], preferred_element_type=jnp.float32)
    h = _ln_relu(h + a2[0:1], a2[1:2], a2[2:3])

    h = jnp.dot(h.astype(wdt), w3_ref[...], preferred_element_type=jnp.float32)
    h = _ln_relu(h + a3[0:1], a3[1:2], a3[2:3])

    q = jnp.dot(h.astype(wdt), w4_ref[...], preferred_element_type=jnp.float32) + b4
    out_ref[...] = q.astype(out_ref.dtype)


def init_dqn_params(key, input_size, output_size, weight_dtype=jnp.bfloat16):
    """Kaiming-normal weights (fan_in, matching nn.init.kaiming_normal_ on
    PyTorch's (out,in) weight), zero biases; LayerNorm gamma=1, beta=0.

    Weights are stored (in, out).  Per-layer (bias, gamma, beta) are packed
    into a single (3, width) f32 array `aux{i}` to cut DMA operand count.
    The final layer (w4, b4) is lane-padded to a multiple of 128 columns HERE,
    once, so the per-call forward never pays a jnp.pad HBM round-trip.
    weight_dtype=jnp.bfloat16 (default) is the MXU fast path on v6e/v7x and is
    safe on v5e; pass jnp.float32 for bit-faithful f32 numerics.
    """
    dims = [(input_size, H1), (H1, H2), (H2, H3), (H3, output_size)]
    keys = jax.random.split(key, len(dims))
    params = {}
    for i, ((fan_in, fan_out), k) in enumerate(zip(dims, keys), start=1):
        std = (2.0 / fan_in) ** 0.5
        params[f"w{i}"] = (std * jax.random.normal(k, (fan_in, fan_out))).astype(weight_dtype)
    for i, width in zip((1, 2, 3), (H1, H2, H3)):
        bias = jnp.zeros((width,), jnp.float32)
        gamma = jnp.ones((width,), jnp.float32)
        beta = jnp.zeros((width,), jnp.float32)
        params[f"aux{i}"] = jnp.stack([bias, gamma, beta])          # (3, width)

    np_ = _round_up(output_size, 128)                               # lane-dense
    params["w4"] = jnp.pad(params["w4"], ((0, 0), (0, np_ - output_size)))
    params["b4"] = jnp.zeros((1, np_), jnp.float32)                 # bias init 0
    return params


def dqn_forward(x, params, *, output_size, batch_tile=1024, out_dtype=jnp.float32):
    """Fused DQN forward.  `output_size` / `batch_tile` / `out_dtype` are static.

    Returns (B, output_size) in `out_dtype` (f32 by default so TD targets keep
    full precision; use bf16 on v5e to halve the output HBM stream).
    """
    # Mirror PyTorch: a 1-D state vector is promoted to a batch of one.
    if x.ndim == 1:
        x = x[None, :]
    B, F = x.shape
    NP = params["w4"].shape[1]   # lane-padded Q width (multiple of 128)

    # Batch tiling: split B as evenly as possible into n_steps sublane-aligned
    # (multiple-of-8) tiles -> padding is < 8*n_steps rows, never ~TB rows.
    n_steps = pl.cdiv(B, batch_tile)
    if B > 512:
        n_steps = max(n_steps, 2)   # keep both v7x TensorCores busy
    TB = _round_up(pl.cdiv(B, n_steps), 8)
    Bp = n_steps * TB

    xp = jnp.pad(x, ((0, Bp - B), (0, 0))) if Bp != B else x

    in_specs = [
        pl.BlockSpec((TB, F), lambda i: (i, 0)),    # x   : tiled over batch
        pl.BlockSpec((F, H1), lambda i: (0, 0)),    # w1  : resident
        pl.BlockSpec((3, H1), lambda i: (0, 0)),    # b1/g1/be1 packed
        pl.BlockSpec((H1, H2), lambda i: (0, 0)),   # w2
        pl.BlockSpec((3, H2), lambda i: (0, 0)),    # b2/g2/be2
        pl.BlockSpec((H2, H3), lambda i: (0, 0)),   # w3
        pl.BlockSpec((3, H3), lambda i: (0, 0)),    # b3/g3/be3
        pl.BlockSpec((H3, NP), lambda i: (0, 0)),   # w4 (lane-padded at init)
        pl.BlockSpec((1, NP), lambda i: (0, 0)),    # b4 (lane-padded at init)
    ]
    # Note: on v5e, if profiling shows exposed DMA at large TB, add
    # pipeline_mode=pl.Buffered(3) to the x in_spec and this out_spec.
    out_spec = pl.BlockSpec((TB, NP), lambda i: (i, 0))

    q_pad = pl.pallas_call(
        dqn_kernel,
        grid=(n_steps,),
        in_specs=in_specs,
        out_specs=out_spec,
        out_shape=jax.ShapeDtypeStruct((Bp, NP), out_dtype),
        compiler_params=pltpu.CompilerParams(
            dimension_semantics=("parallel",)),
    )(xp,
      params["w1"], params["aux1"],
      params["w2"], params["aux2"],
      params["w3"], params["aux3"],
      params["w4"], params["b4"])

    # Caller-facing (B, output_size).  If the consumer only argmaxes over the
    # first output_size lanes, skip this column slice to save an HBM copy.
    return q_pad[:B, :output_size]


def _ref_forward(x, p, output_size):
    """Pure-JAX reference (PyTorch semantics), using the same stored weights."""
    if x.ndim == 1:
        x = x[None, :]

    def ln_relu(h, g, b):
        mu = h.mean(-1, keepdims=True)
        var = ((h - mu) ** 2).mean(-1, keepdims=True)
        return jnp.maximum((h - mu) / jnp.sqrt(var + LN_EPS) * g + b, 0.0)

    h = x
    for i in (1, 2, 3):
        bias, g, be = p[f"aux{i}"]
        h = ln_relu(h @ p[f"w{i}"].astype(jnp.float32) + bias, g, be)
    q = h @ p["w4"].astype(jnp.float32) + p["b4"]
    return q[:, :output_size]


if __name__ == "__main__":
    input_size = 8    # small flattened game state
    output_size = 4   # number of actions
    batch = 2

    key = jax.random.PRNGKey(0)
    k_params, k_x, k_xl = jax.random.split(key, 3)

    # f32 weights: tight-tolerance check vs the PyTorch-semantics reference.
    params_f32 = init_dqn_params(k_params, input_size, output_size,
                                 weight_dtype=jnp.float32)
    # bf16 weights (the recommended default on v6e/v7x): loose-tolerance check.
    params_bf16 = init_dqn_params(k_params, input_size, output_size)

    fwd = jax.jit(functools.partial(dqn_forward, output_size=output_size))

    # Small (acting-loop sized) batch.
    x_small = jax.random.normal(k_x, (batch, input_size), dtype=jnp.float32)
    q_small = fwd(x_small, params_f32)
    jax.block_until_ready(q_small)
    assert q_small.shape == (batch, output_size)
    assert q_small.dtype == jnp.float32
    assert jnp.allclose(q_small, _ref_forward(x_small, params_f32, output_size),
                        atol=1e-3, rtol=1e-3)

    # Replay-buffer sized batch: exercises batch tiling / grid with minimal
    # padding (300 -> 304 rows instead of 512).
    x_large = jax.random.normal(k_xl, (300, input_size), dtype=jnp.float32)
    q_large = fwd(x_large, params_f32)
    jax.block_until_ready(q_large)
    assert q_large.shape == (300, output_size)
    assert jnp.allclose(q_large, _ref_forward(x_large, params_f32, output_size),
                        atol=1e-3, rtol=1e-3)

    # bf16-weight path: activations are cast to bf16 before each dot while
    # accumulation/LN stay f32 -> compare at bf16 tolerance.
    q_bf16 = fwd(x_large, params_bf16)
    jax.block_until_ready(q_bf16)
    assert q_bf16.shape == (300, output_size)
    assert jnp.allclose(q_bf16, _ref_forward(x_large, params_bf16, output_size),
                        atol=5e-2, rtol=5e-2)

    print("KERNEL_OK")
</pallas_src>

<mosaic_0001>
module attributes {stable_mosaic.version = 11 : i64} {
  func.func @dqn_kernel(%arg0: i32, %arg1: memref<8x8xf32, #tpu.memory_space<vmem>>, %arg2: memref<8x128xf32, #tpu.memory_space<vmem>>, %arg3: memref<3x128xf32, #tpu.memory_space<vmem>>, %arg4: memref<128x128xf32, #tpu.memory_space<vmem>>, %arg5: memref<3x128xf32, #tpu.memory_space<vmem>>, %arg6: memref<128x64xf32, #tpu.memory_space<vmem>>, %arg7: memref<3x64xf32, #tpu.memory_space<vmem>>, %arg8: memref<64x128xf32, #tpu.memory_space<vmem>>, %arg9: memref<1x128xf32, #tpu.memory_space<vmem>>, %arg10: memref<8x128xf32, #tpu.memory_space<vmem>>) attributes {dimension_semantics = [#tpu.dimension_semantics<parallel>], iteration_bounds = array<i64: 1>, scalar_prefetch = 0 : i64, scratch_operands = 0 : i64, tpu.core_type = #tpu.core_type<tc>, window_params = [{transform_indices = @transform_0, window_bounds = array<i64: 8, 8>}, {pipeline_mode = #tpu.pipeline_mode<synchronous>, transform_indices = @transform_1, window_bounds = array<i64: 8, 128>}, {pipeline_mode = #tpu.pipeline_mode<synchronous>, transform_indices = @transform_2, window_bounds = array<i64: 3, 128>}, {pipeline_mode = #tpu.pipeline_mode<synchronous>, transform_indices = @transform_3, window_bounds = array<i64: 128, 128>}, {pipeline_mode = #tpu.pipeline_mode<synchronous>, transform_indices = @transform_4, window_bounds = array<i64: 3, 128>}, {pipeline_mode = #tpu.pipeline_mode<synchronous>, transform_indices = @transform_5, window_bounds = array<i64: 128, 64>}, {pipeline_mode = #tpu.pipeline_mode<synchronous>, transform_indices = @transform_6, window_bounds = array<i64: 3, 64>}, {pipeline_mode = #tpu.pipeline_mode<synchronous>, transform_indices = @transform_7, window_bounds = array<i64: 64, 128>}, {pipeline_mode = #tpu.pipeline_mode<synchronous>, transform_indices = @transform_8, window_bounds = array<i64: 1, 128>}, {transform_indices = @transform_9, window_bounds = array<i64: 8, 128>}]} {
    %c0 = arith.constant 0 : index
    %c0_0 = arith.constant 0 : index
    %0 = vector.load %arg3[%c0, %c0_0] : memref<3x128xf32, #tpu.memory_space<vmem>>, vector<3x128xf32>
    %c0_1 = arith.constant 0 : index
    %c0_2 = arith.constant 0 : index
    %1 = vector.load %arg5[%c0_1, %c0_2] : memref<3x128xf32, #tpu.memory_space<vmem>>, vector<3x128xf32>
    %c0_3 = arith.constant 0 : index
    %c0_4 = arith.constant 0 : index
    %2 = vector.load %arg7[%c0_3, %c0_4] : memref<3x64xf32, #tpu.memory_space<vmem>>, vector<3x64xf32>
    %c0_5 = arith.constant 0 : index
    %c0_6 = arith.constant 0 : index
    %3 = vector.load %arg9[%c0_5, %c0_6] : memref<1x128xf32, #tpu.memory_space<vmem>>, vector<1x128xf32>
    %c0_7 = arith.constant 0 : index
    %c0_8 = arith.constant 0 : index
    %4 = vector.load %arg1[%c0_7, %c0_8] : memref<8x8xf32, #tpu.memory_space<vmem>>, vector<8x8xf32>
    %c0_9 = arith.constant 0 : index
    %c0_10 = arith.constant 0 : index
    %5 = vector.load %arg2[%c0_9, %c0_10] : memref<8x128xf32, #tpu.memory_space<vmem>>, vector<8x128xf32>
    %cst = arith.constant dense<0.000000e+00> : vector<8x128xf32>
    %6 = tpu.matmul %4, %5, %cst {dimension_numbers = #tpu.dot_dimension_numbers<[1], [0], [0], [1], [0, 0, 1, 1], [], []>} : vector<8x8xf32>, vector<8x128xf32>, vector<8x128xf32> -> vector<8x128xf32>
    %7 = vector.extract_strided_slice %0 {offsets = [0, 0], sizes = [1, 128], strides = [1, 1]} : vector<3x128xf32> to vector<1x128xf32>
    %8 = vector.broadcast %7 : vector<1x128xf32> to vector<8x128xf32>
    %9 = arith.addf %6, %8 : vector<8x128xf32>
    %10 = vector.extract_strided_slice %0 {offsets = [1, 0], sizes = [1, 128], strides = [1, 1]} : vector<3x128xf32> to vector<1x128xf32>
    %11 = vector.extract_strided_slice %0 {offsets = [2, 0], sizes = [1, 128], strides = [1, 1]} : vector<3x128xf32> to vector<1x128xf32>
    %cst_11 = arith.constant dense<0.000000e+00> : vector<8xf32>
    %12 = vector.multi_reduction <add>, %9, %cst_11 [1] : vector<8x128xf32> to vector<8xf32>
    %13 = vector.shape_cast %12 : vector<8xf32> to vector<8x1xf32>
    %14 = arith.mulf %9, %9 : vector<8x128xf32>
    %cst_12 = arith.constant dense<0.000000e+00> : vector<8xf32>
    %15 = vector.multi_reduction <add>, %14, %cst_12 [1] : vector<8x128xf32> to vector<8xf32>
    %16 = vector.shape_cast %15 : vector<8xf32> to vector<8x1xf32>
    %cst_13 = arith.constant 7.812500e-03 : f32
    %17 = vector.broadcast %cst_13 : f32 to vector<8x1xf32>
    %18 = arith.mulf %13, %17 : vector<8x1xf32>
    %cst_14 = arith.constant 7.812500e-03 : f32
    %19 = vector.broadcast %cst_14 : f32 to vector<8x1xf32>
    %20 = arith.mulf %16, %19 : vector<8x1xf32>
    %21 = arith.mulf %18, %18 : vector<8x1xf32>
    %22 = arith.subf %20, %21 : vector<8x1xf32>
    %cst_15 = arith.constant 0.000000e+00 : f32
    %23 = vector.broadcast %cst_15 : f32 to vector<8x1xf32>
    %24 = arith.maximumf %22, %23 : vector<8x1xf32>
    %25 = vector.broadcast %18 : vector<8x1xf32> to vector<8x128xf32>
    %26 = arith.subf %9, %25 : vector<8x128xf32>
    %cst_16 = arith.constant 9.99999974E-6 : f32
    %27 = vector.broadcast %cst_16 : f32 to vector<8x1xf32>
    %28 = arith.addf %24, %27 : vector<8x1xf32>
    %29 = math.rsqrt %28 : vector<8x1xf32>
    %30 = vector.broadcast %29 : vector<8x1xf32> to vector<8x128xf32>
    %31 = arith.mulf %26, %30 : vector<8x128xf32>
    %32 = vector.broadcast %10 : vector<1x128xf32> to vector<8x128xf32>
    %33 = arith.mulf %31, %32 : vector<8x128xf32>
    %34 = vector.broadcast %11 : vector<1x128xf32> to vector<8x128xf32>
    %35 = arith.addf %33, %34 : vector<8x128xf32>
    %cst_17 = arith.constant 0.000000e+00 : f32
    %36 = vector.broadcast %cst_17 : f32 to vector<8x128xf32>
    %37 = arith.maximumf %35, %36 : vector<8x128xf32>
    %c0_18 = arith.constant 0 : index
    %c0_19 = arith.constant 0 : index
    %38 = vector.load %arg4[%c0_18, %c0_19] : memref<128x128xf32, #tpu.memory_space<vmem>>, vector<128x128xf32>
    %cst_20 = arith.constant dense<0.000000e+00> : vector<8x128xf32>
    %39 = tpu.matmul %37, %38, %cst_20 {dimension_numbers = #tpu.dot_dimension_numbers<[1], [0], [0], [1], [0, 0, 1, 1], [], []>} : vector<8x128xf32>, vector<128x128xf32>, vector<8x128xf32> -> vector<8x128xf32>
    %40 = vector.extract_strided_slice %1 {offsets = [0, 0], sizes = [1, 128], strides = [1, 1]} : vector<3x128xf32> to vector<1x128xf32>
    %41 = vector.broadcast %40 : vector<1x128xf32> to vector<8x128xf32>
    %42 = arith.addf %39, %41 : vector<8x128xf32>
    %43 = vector.extract_strided_slice %1 {offsets = [1, 0], sizes = [1, 128], strides = [1, 1]} : vector<3x128xf32> to vector<1x128xf32>
    %44 = vector.extract_strided_slice %1 {offsets = [2, 0], sizes = [1, 128], strides = [1, 1]} : vector<3x128xf32> to vector<1x128xf32>
    %cst_21 = arith.constant dense<0.000000e+00> : vector<8xf32>
    %45 = vector.multi_reduction <add>, %42, %cst_21 [1] : vector<8x128xf32> to vector<8xf32>
    %46 = vector.shape_cast %45 : vector<8xf32> to vector<8x1xf32>
    %47 = arith.mulf %42, %42 : vector<8x128xf32>
    %cst_22 = arith.constant dense<0.000000e+00> : vector<8xf32>
    %48 = vector.multi_reduction <add>, %47, %cst_22 [1] : vector<8x128xf32> to vector<8xf32>
    %49 = vector.shape_cast %48 : vector<8xf32> to vector<8x1xf32>
    %cst_23 = arith.constant 7.812500e-03 : f32
    %50 = vector.broadcast %cst_23 : f32 to vector<8x1xf32>
    %51 = arith.mulf %46, %50 : vector<8x1xf32>
    %cst_24 = arith.constant 7.812500e-03 : f32
    %52 = vector.broadcast %cst_24 : f32 to vector<8x1xf32>
    %53 = arith.mulf %49, %52 : vector<8x1xf32>
    %54 = arith.mulf %51, %51 : vector<8x1xf32>
    %55 = arith.subf %53, %54 : vector<8x1xf32>
    %cst_25 = arith.constant 0.000000e+00 : f32
    %56 = vector.broadcast %cst_25 : f32 to vector<8x1xf32>
    %57 = arith.maximumf %55, %56 : vector<8x1xf32>
    %58 = vector.broadcast %51 : vector<8x1xf32> to vector<8x128xf32>
    %59 = arith.subf %42, %58 : vector<8x128xf32>
    %cst_26 = arith.constant 9.99999974E-6 : f32
    %60 = vector.broadcast %cst_26 : f32 to vector<8x1xf32>
    %61 = arith.addf %57, %60 : vector<8x1xf32>
    %62 = math.rsqrt %61 : vector<8x1xf32>
    %63 = vector.broadcast %62 : vector<8x1xf32> to vector<8x128xf32>
    %64 = arith.mulf %59, %63 : vector<8x128xf32>
    %65 = vector.broadcast %43 : vector<1x128xf32> to vector<8x128xf32>
    %66 = arith.mulf %64, %65 : vector<8x128xf32>
    %67 = vector.broadcast %44 : vector<1x128xf32> to vector<8x128xf32>
    %68 = arith.addf %66, %67 : vector<8x128xf32>
    %cst_27 = arith.constant 0.000000e+00 : f32
    %69 = vector.broadcast %cst_27 : f32 to vector<8x128xf32>
    %70 = arith.maximumf %68, %69 : vector<8x128xf32>
    %c0_28 = arith.constant 0 : index
    %c0_29 = arith.constant 0 : index
    %71 = vector.load %arg6[%c0_28, %c0_29] : memref<128x64xf32, #tpu.memory_space<vmem>>, vector<128x64xf32>
    %cst_30 = arith.constant dense<0.000000e+00> : vector<8x64xf32>
    %72 = tpu.matmul %70, %71, %cst_30 {dimension_numbers = #tpu.dot_dimension_numbers<[1], [0], [0], [1], [0, 0, 1, 1], [], []>} : vector<8x128xf32>, vector<128x64xf32>, vector<8x64xf32> -> vector<8x64xf32>
    %73 = vector.extract_strided_slice %2 {offsets = [0, 0], sizes = [1, 64], strides = [1, 1]} : vector<3x64xf32> to vector<1x64xf32>
    %74 = vector.broadcast %73 : vector<1x64xf32> to vector<8x64xf32>
    %75 = arith.addf %72, %74 : vector<8x64xf32>
    %76 = vector.extract_strided_slice %2 {offsets = [1, 0], sizes = [1, 64], strides = [1, 1]} : vector<3x64xf32> to vector<1x64xf32>
    %77 = vector.extract_strided_slice %2 {offsets = [2, 0], sizes = [1, 64], strides = [1, 1]} : vector<3x64xf32> to vector<1x64xf32>
    %cst_31 = arith.constant dense<0.000000e+00> : vector<8xf32>
    %78 = vector.multi_reduction <add>, %75, %cst_31 [1] : vector<8x64xf32> to vector<8xf32>
    %79 = vector.shape_cast %78 : vector<8xf32> to vector<8x1xf32>
    %80 = arith.mulf %75, %75 : vector<8x64xf32>
    %cst_32 = arith.constant dense<0.000000e+00> : vector<8xf32>
    %81 = vector.multi_reduction <add>, %80, %cst_32 [1] : vector<8x64xf32> to vector<8xf32>
    %82 = vector.shape_cast %81 : vector<8xf32> to vector<8x1xf32>
    %cst_33 = arith.constant 1.562500e-02 : f32
    %83 = vector.broadcast %cst_33 : f32 to vector<8x1xf32>
    %84 = arith.mulf %79, %83 : vector<8x1xf32>
    %cst_34 = arith.constant 1.562500e-02 : f32
    %85 = vector.broadcast %cst_34 : f32 to vector<8x1xf32>
    %86 = arith.mulf %82, %85 : vector<8x1xf32>
    %87 = arith.mulf %84, %84 : vector<8x1xf32>
    %88 = arith.subf %86, %87 : vector<8x1xf32>
    %cst_35 = arith.constant 0.000000e+00 : f32
    %89 = vector.broadcast %cst_35 : f32 to vector<8x1xf32>
    %90 = arith.maximumf %88, %89 : vector<8x1xf32>
    %91 = vector.broadcast %84 : vector<8x1xf32> to vector<8x64xf32>
    %92 = arith.subf %75, %91 : vector<8x64xf32>
    %cst_36 = arith.constant 9.99999974E-6 : f32
    %93 = vector.broadcast %cst_36 : f32 to vector<8x1xf32>
    %94 = arith.addf %90, %93 : vector<8x1xf32>
    %95 = math.rsqrt %94 : vector<8x1xf32>
    %96 = vector.broadcast %95 : vector<8x1xf32> to vector<8x64xf32>
    %97 = arith.mulf %92, %96 : vector<8x64xf32>
    %98 = vector.broadcast %76 : vector<1x64xf32> to vector<8x64xf32>
    %99 = arith.mulf %97, %98 : vector<8x64xf32>
    %100 = vector.broadcast %77 : vector<1x64xf32> to vector<8x64xf32>
    %101 = arith.addf %99, %100 : vector<8x64xf32>
    %cst_37 = arith.constant 0.000000e+00 : f32
    %102 = vector.broadcast %cst_37 : f32 to vector<8x64xf32>
    %103 = arith.maximumf %101, %102 : vector<8x64xf32>
    %c0_38 = arith.constant 0 : index
    %c0_39 = arith.constant 0 : index
    %104 = vector.load %arg8[%c0_38, %c0_39] : memref<64x128xf32, #tpu.memory_space<vmem>>, vector<64x128xf32>
    %cst_40 = arith.constant dense<0.000000e+00> : vector<8x128xf32>
    %105 = tpu.matmul %103, %104, %cst_40 {dimension_numbers = #tpu.dot_dimension_numbers<[1], [0], [0], [1], [0, 0, 1, 1], [], []>} : vector<8x64xf32>, vector<64x128xf32>, vector<8x128xf32> -> vector<8x128xf32>
    %106 = vector.broadcast %3 : vector<1x128xf32> to vector<8x128xf32>
    %107 = arith.addf %105, %106 : vector<8x128xf32>
    %c0_41 = arith.constant 0 : index
    %c0_42 = arith.constant 0 : index
    %108 = vector.load %arg10[%c0_41, %c0_42] : memref<8x128xf32, #tpu.memory_space<vmem>>, vector<8x128xf32>
    tpu.vector_store %arg10[%c0_41, %c0_42], %107 {strides = array<i32>} : memref<8x128xf32, #tpu.memory_space<vmem>>, vector<8x128xf32>,
    return
  }
  func.func @transform_0(%arg0: i32) -> (i32, i32) {
    %c0_i32 = arith.constant 0 : i32
    %c0_i32_0 = arith.constant 0 : i32
    return %arg0, %c0_i32 : i32, i32
  }
  func.func @transform_1(%arg0: i32) -> (i32, i32) {
    %c0_i32 = arith.constant 0 : i32
    %c0_i32_0 = arith.constant 0 : i32
    %c0_i32_1 = arith.constant 0 : i32
    return %c0_i32, %c0_i32_0 : i32, i32
  }
  func.func @transform_2(%arg0: i32) -> (i32, i32) {
    %c0_i32 = arith.constant 0 : i32
    %c0_i32_0 = arith.constant 0 : i32
    %c0_i32_1 = arith.constant 0 : i32
    return %c0_i32, %c0_i32_0 : i32, i32
  }
  func.func @transform_3(%arg0: i32) -> (i32, i32) {
    %c0_i32 = arith.constant 0 : i32
    %c0_i32_0 = arith.constant 0 : i32
    %c0_i32_1 = arith.constant 0 : i32
    return %c0_i32, %c0_i32_0 : i32, i32
  }
  func.func @transform_4(%arg0: i32) -> (i32, i32) {
    %c0_i32 = arith.constant 0 : i32
    %c0_i32_0 = arith.constant 0 : i32
    %c0_i32_1 = arith.constant 0 : i32
    return %c0_i32, %c0_i32_0 : i32, i32
  }
  func.func @transform_5(%arg0: i32) -> (i32, i32) {
    %c0_i32 = arith.constant 0 : i32
    %c0_i32_0 = arith.constant 0 : i32
    %c0_i32_1 = arith.constant 0 : i32
    return %c0_i32, %c0_i32_0 : i32, i32
  }
  func.func @transform_6(%arg0: i32) -> (i32, i32) {
    %c0_i32 = arith.constant 0 : i32
    %c0_i32_0 = arith.constant 0 : i32
    %c0_i32_1 = arith.constant 0 : i32
    return %c0_i32, %c0_i32_0 : i32, i32
  }
  func.func @transform_7(%arg0: i32) -> (i32, i32) {
    %c0_i32 = arith.constant 0 : i32
    %c0_i32_0 = arith.constant 0 : i32
    %c0_i32_1 = arith.constant 0 : i32
    return %c0_i32, %c0_i32_0 : i32, i32
  }
  func.func @transform_8(%arg0: i32) -> (i32, i32) {
    %c0_i32 = arith.constant 0 : i32
    %c0_i32_0 = arith.constant 0 : i32
    %c0_i32_1 = arith.constant 0 : i32
    return %c0_i32, %c0_i32_0 : i32, i32
  }
  func.func @transform_9(%arg0: i32) -> (i32, i32) {
    %c0_i32 = arith.constant 0 : i32
    %c0_i32_0 = arith.constant 0 : i32
    return %arg0, %c0_i32 : i32, i32
  }
}

</mosaic_0001>

<bundles_post_ra>
// kernel: dqn_forward.1
= control target key start
LH: loop header
LB: loop body
LE: loop exit
PB: predicated region body
PF: predicated region fallthrough
CT: control target
= control target key end

     0   :  { %vm42_vm0 = vcmask 64512   ;;  %v616_v0 = vmov 0.0   ;;  %vm617_vm1 = vmmov 0   ;;  %v38_v3 = vlaneseq  ;;  %s903_s1 = inlined_call_operand.vmem [shape: f32[8,128], index: 1, kind: input, shape index: {}]   ;;  %s904_s0 = inlined_call_operand.vmem [shape: f32[8,8], index: 0, kind: input, shape index: {}]   ;;  %s905_s2 = inlined_call_operand.vmem [shape: f32[3,128], index: 2, kind: input, shape index: {}]   ;;  %s906_s3 = inlined_call_operand.vmem [shape: f32[128,128], index: 3, kind: input, shape index: {}]   ;;  %s907_s4 = inlined_call_operand.vmem [shape: f32[3,128], index: 4, kind: input, shape index: {}]   ;;  %s908_s5 = inlined_call_operand.vmem [shape: f32[128,64], index: 5, kind: input, shape index: {}]   ;;  %s909_s6 = inlined_call_operand.vmem [shape: f32[3,64], index: 6, kind: input, shape index: {}]   ;;  %s910_s7 = inlined_call_operand.vmem [shape: f32[64,128], index: 7, kind: input, shape index: {}]   ;;  %s911_s8 = inlined_call_operand.vmem [shape: f32[1,128], index: 8, kind: input, shape index: {}]   ;;  %s912_s9 = inlined_call_operand.vmem [shape: f32[8,128], index: 9, kind: output, shape index: {}]  }
   0x1   :  { %514 = vmatprep.subr.mxu0 %v616_v0  ;;  %v37_v1 = vld [vmem:[%s903_s1] sm:$0xff]  ;;  %516 = vmatprep.mubr.msk.f32.mxu0 %vm617_vm1, %v616_v0  ;;  %v156_v12 = vld [vmem:[%s906_s3 + $0x78] sm:$0xff]  ;;  %v155_v13 = vld [vmem:[%s906_s3 + $0x70] sm:$0xff]  ;;  %vm346_vm2 = vcmask 523264  }
   0x2   :  { %v36_v2 = vld [vmem:[%s904_s0] sm:$0xff]  ;;  %515 = vmatpush3.msra.mxu0 %v37_v1  ;;  %519 = vmatprep.subr.mxu1 %v616_v0  ;;  %v683_v4 = vshrl.u32 %v38_v3, 7  ;;  %v154_v14 = vld [vmem:[%s906_s3 + $0x68] sm:$0xff]  ;;  %v152_v16 = vld [vmem:[%s906_s3 + $0x58] sm:$0xff] }
   0x3   :  { %517 = vmatmul.mubr.msk.f32.vlgmr.msra.gmra.mxu0 %vm42_vm0, %v36_v2  ;;  %551 = vmatprep.mubr.msk.f32.mxu1 %vm617_vm1, %v616_v0  ;;  %v691_v6 = vld [vmem:[%s905_s2] sm:$0x7]  ;;  %v151_v17 = vld [vmem:[%s906_s3 + $0x50] sm:$0xff]  ;;  %v150_v18 = vld [vmem:[%s906_s3 + $0x48] sm:$0xff] }
   0x4   :  { %554 = vmatprep.subr.mxu0 %v616_v0  ;;  %586 = vmatprep.mubr.msk.f32.mxu0 %vm617_vm1, %v616_v0  ;;  %v686_v5 = vsub.s32 0, %v683_v4  ;;  %v153_v15 = vld [vmem:[%s906_s3 + $0x60] sm:$0xff]  ;;  %v148_v20 = vld [vmem:[%s906_s3 + $0x38] sm:$0xff]  ;;  %v147_v21 = vld [vmem:[%s906_s3 + $0x30] sm:$0xff]  ;;  %v765_v36 = vsub.s32 1, %v683_v4  ;;  %v768_v37 = vsub.s32 2, %v683_v4 }
   0x5   :  { %520 = vmatpush3.msra.mxu1 %v156_v12  ;;  %v149_v19 = vld [vmem:[%s906_s3 + $0x40] sm:$0xff]  ;;  %v146_v22 = vld [vmem:[%s906_s3 + $0x28] sm:$0xff]  ;;  %v144_v24 = vld [vmem:[%s906_s3 + $0x18] sm:$0xff] }
   0x6   :  { %v41_v7 = vrot.slane %v691_v6, %v686_v5  ;;  %521 = vmatprep.subr.mxu1 %v616_v0  ;;  %v145_v23 = vld [vmem:[%s906_s3 + $0x20] sm:$0xff]  ;;  %v143_v25 = vld [vmem:[%s906_s3 + $0x10] sm:$0xff]  ;;  %v142_v26 = vld [vmem:[%s906_s3 + $0x8] sm:$0xff]  ;;  %v133_v38 = vrot.slane %v691_v6, %v765_v36  ;;  %v138_v42 = vrot.slane %v691_v6, %v768_v37 }
   0x7   :  { %522 = vmatpush3.msra.mxu1 %v155_v13  ;;  %v141_v27 = vld [vmem:[%s906_s3] sm:$0xff]  ;;  %v271_v52 = vld [vmem:[%s908_s5 + $0x78] sm:$0xff]  ;;  %v270_v53 = vld [vmem:[%s908_s5 + $0x70] sm:$0xff] }
   0x8   :  { %523 = vmatprep.subr.mxu1 %v616_v0  ;;  %v780_v46 = vld [vmem:[%s907_s4] sm:$0x7]  ;;  %555 = vmatpush3.msra.mxu0 %v271_v52  ;;  %v269_v54 = vld [vmem:[%s908_s5 + $0x68] sm:$0xff]  ;;  %v267_v56 = vld [vmem:[%s908_s5 + $0x58] sm:$0xff] }
   0x9   :  { %524 = vmatpush3.msra.mxu1 %v154_v14  ;;  %v160_v47 = vrot.slane %v780_v46, %v686_v5  ;;  %556 = vmatprep.subr.mxu0 %v616_v0  ;;  %v268_v55 = vld [vmem:[%s908_s5 + $0x60] sm:$0xff]  ;;  %v266_v57 = vld [vmem:[%s908_s5 + $0x50] sm:$0xff]  ;;  %v265_v58 = vld [vmem:[%s908_s5 + $0x48] sm:$0xff]  ;;  %v248_v14 = vrot.slane %v780_v46, %v765_v36 }
   0xa   :  { %525 = vmatprep.subr.mxu1 %v616_v0  ;;  %557 = vmatpush3.msra.mxu0 %v270_v53  ;;  %v264_v59 = vld [vmem:[%s908_s5 + $0x40] sm:$0xff]  ;;  %v263_v60 = vld [vmem:[%s908_s5 + $0x38] sm:$0xff]  ;;  %v262_v61 = vld [vmem:[%s908_s5 + $0x30] sm:$0xff] }
   0xb   :  { %526 = vmatpush3.msra.mxu1 %v153_v15  ;;  %558 = vmatprep.subr.mxu0 %v616_v0  ;;  %v261_v62 = vld [vmem:[%s908_s5 + $0x28] sm:$0xff]  ;;  %v260_v63 = vld [vmem:[%s908_s5 + $0x20] sm:$0xff]  ;;  %v259_v1 = vld [vmem:[%s908_s5 + $0x18] sm:$0xff] }
   0xc   :  { %527 = vmatprep.subr.mxu1 %v616_v0  ;;  %559 = vmatpush3.msra.mxu0 %v269_v54  ;;  %v258_v2 = vld [vmem:[%s908_s5 + $0x10] sm:$0xff]  ;;  %v257_v3 = vld [vmem:[%s908_s5 + $0x8] sm:$0xff]  ;;  %v256_v4 = vld [vmem:[%s908_s5] sm:$0xff] }
   0xd   :  { %528 = vmatpush3.msra.mxu1 %v152_v16  ;;  %560 = vmatprep.subr.mxu0 %v616_v0  ;;  %v467_v54 = vld [vmem:[%s911_s8] ss:$0 sm:$0xff] }
   0xe   :  { %529 = vmatprep.subr.mxu1 %v616_v0  ;;  %561 = vmatpush3.msra.mxu0 %v268_v55 }
   0xf   :  { %530 = vmatpush3.msra.mxu1 %v151_v17  ;;  %562 = vmatprep.subr.mxu0 %v616_v0  ;;  %v253_v17 = vrot.slane %v780_v46, %v768_v37 }
  0x10   :  { %531 = vmatprep.subr.mxu1 %v616_v0  ;;  %563 = vmatpush3.msra.mxu0 %v267_v56 }
  0x11   :  { %532 = vmatpush3.msra.mxu1 %v150_v18  ;;  %564 = vmatprep.subr.mxu0 %v616_v0 }
  0x12   :  { %533 = vmatprep.subr.mxu1 %v616_v0  ;;  %565 = vmatpush3.msra.mxu0 %v266_v57 }
  0x13   :  { %534 = vmatpush3.msra.mxu1 %v149_v19  ;;  %566 = vmatprep.subr.mxu0 %v616_v0 }
  0x14   :  { %535 = vmatprep.subr.mxu1 %v616_v0  ;;  %567 = vmatpush3.msra.mxu0 %v265_v58 }
  0x15   :  { %536 = vmatpush3.msra.mxu1 %v148_v20  ;;  %568 = vmatprep.subr.mxu0 %v616_v0 }
  0x16   :  { %537 = vmatprep.subr.mxu1 %v616_v0  ;;  %569 = vmatpush3.msra.mxu0 %v264_v59 }
  0x17   :  { %538 = vmatpush3.msra.mxu1 %v147_v21  ;;  %570 = vmatprep.subr.mxu0 %v616_v0 }
  0x18   :  { %539 = vmatprep.subr.mxu1 %v616_v0  ;;  %571 = vmatpush3.msra.mxu0 %v263_v60 }
  0x19   :  { %540 = vmatpush3.msra.mxu1 %v146_v22  ;;  %572 = vmatprep.subr.mxu0 %v616_v0  ;;  %v34_v22 = vld [vmem:[%s909_s6] sm:$0x7] }
  0x1a   :  { %541 = vmatprep.subr.mxu1 %v616_v0  ;;  %573 = vmatpush3.msra.mxu0 %v262_v61 }
  0x1b   :  { %542 = vmatpush3.msra.mxu1 %v145_v23  ;;  %574 = vmatprep.subr.mxu0 %v616_v0  ;;  %v275_v23 = vrot.slane %v34_v22, %v686_v5  ;;  %v379_v5 = vld [vmem:[%s910_s7 + $0x28] sm:$0xff] }
  0x1c   :  { %543 = vmatprep.subr.mxu1 %v616_v0  ;;  %575 = vmatpush3.msra.mxu0 %v261_v62 }
  0x1d   :  { %544 = vmatpush3.msra.mxu1 %v144_v24  ;;  %576 = vmatprep.subr.mxu0 %v616_v0 }
  0x1e   :  { %545 = vmatprep.subr.mxu1 %v616_v0  ;;  %577 = vmatpush3.msra.mxu0 %v260_v63 }
  0x1f   :  { %546 = vmatpush3.msra.mxu1 %v143_v25  ;;  %578 = vmatprep.subr.mxu0 %v616_v0 }
  0x20   :  { %547 = vmatprep.subr.mxu1 %v616_v0  ;;  %579 = vmatpush3.msra.mxu0 %v259_v1 }
  0x21   :  { %548 = vmatpush3.msra.mxu1 %v142_v26  ;;  %580 = vmatprep.subr.mxu0 %v616_v0 }
  0x22   :  { %549 = vmatprep.subr.mxu1 %v616_v0  ;;  %581 = vmatpush3.msra.mxu0 %v258_v2 }
  0x23   :  { %550 = vmatpush3.msra.mxu1 %v141_v27  ;;  %582 = vmatprep.subr.mxu0 %v616_v0 }
  0x24   :  { %589 = vmatprep.subr.mxu1 %v616_v0  ;;  %583 = vmatpush3.msra.mxu0 %v257_v3 }
  0x25   :  { %584 = vmatprep.subr.mxu0 %v616_v0 }
  0x26   :  { %585 = vmatpush3.msra.mxu0 %v256_v4 }
  0xc3   :  { %v112_v8 = vpop.f32.mrf.mxu0 }
  0xc4   :  { %v695_v9 = vadd.f32 %v112_v8, %v41_v7 }
  0xc5   :  { %v518_v10 = vpop.f32.mrf.mxu0 }
  0xc6   :  { %116 = vadd.xlane.f32.xlu0 %v695_v9  ;;  %v118_v11 = vmul.f32 %v695_v9, %v695_v9 }
  0xca   :  { %119 = vadd.xlane.f32.xlu0 %v118_v11 }
 0x14f   :  { %v117_v28 = vpop.xlane.xlu0 %116 }
 0x150   :  { %v121_v29 = vmul.f32 0.0078125, %v117_v28 }
 0x152   :  { %v123_v31 = vmul.f32 %v121_v29, %v121_v29  ;;  %v126_v39 = vsub.f32 %v695_v9, %v121_v29 }
 0x153   :  { %v120_v30 = vpop.xlane.xlu0 %119 }
 0x154   :  { %v122_v32 = vmul.f32 0.0078125, %v120_v30  ;;  %v381_v30 = vld [vmem:[%s910_s7 + $0x38] sm:$0xff] }
 0x156   :  { %v124_v33 = vsub.f32 %v122_v32, %v123_v31  ;;  %v380_v31 = vld [vmem:[%s910_s7 + $0x30] sm:$0xff]  ;;  %v378_v32 = vld [vmem:[%s910_s7 + $0x20] sm:$0xff] }
 0x158   :  { %v125_v34 = vmax.f32 %v124_v33, 0.0  ;;  %v377_v33 = vld [vmem:[%s910_s7 + $0x18] sm:$0xff] }
 0x15a   :  { %v127_v35 = vadd.f32 1e-05, %v125_v34  ;;  %v376_v34 = vld [vmem:[%s910_s7 + $0x10] sm:$0xff] }
 0x15c   :  { %610 = vrsqrt.f32 %v127_v35  ;;  %v375_v35 = vld [vmem:[%s910_s7 + $0x8] sm:$0xff] }
 0x169   :  { %v611_v40 = vpop.eup %610 }
 0x16a   :  { %v129_v41 = vmul.f32 %v611_v40, %v126_v39 }
 0x16c   :  { %v134_v43 = vmul.f32 %v133_v38, %v129_v41  ;;  %v374_v38 = vld [vmem:[%s910_s7] sm:$0xff] }
 0x16e   :  { %v139_v44 = vadd.f32 %v138_v42, %v134_v43 }
 0x170   :  { %v140_v45 = vmax.f32 %v139_v44, 0.0 }
 0x172   :  { %552 = vmatmul.mubr.f32.vlgmr.msra.gmra.mxu1 %v140_v45 }
 0x173   :  { %605 = vmatprep.mubr.msk.f32.mxu1 %vm617_vm1, %v616_v0  ;;  %590 = vmatpush3.msra.mxu1 %v381_v30 }
 0x174   :  { %591 = vmatprep.subr.mxu1 %v616_v0 }
 0x175   :  { %592 = vmatpush3.msra.mxu1 %v380_v31 }
 0x176   :  { %593 = vmatprep.subr.mxu1 %v616_v0 }
 0x177   :  { %594 = vmatpush3.msra.mxu1 %v379_v5 }
 0x178   :  { %595 = vmatprep.subr.mxu1 %v616_v0 }
 0x179   :  { %596 = vmatpush3.msra.mxu1 %v378_v32 }
 0x17a   :  { %597 = vmatprep.subr.mxu1 %v616_v0 }
 0x17b   :  { %598 = vmatpush3.msra.mxu1 %v377_v33 }
 0x17c   :  { %599 = vmatprep.subr.mxu1 %v616_v0 }
 0x17d   :  { %600 = vmatpush3.msra.mxu1 %v376_v34 }
 0x17e   :  { %601 = vmatprep.subr.mxu1 %v616_v0 }
 0x17f   :  { %602 = vmatpush3.msra.mxu1 %v375_v35 }
 0x180   :  { %603 = vmatprep.subr.mxu1 %v616_v0 }
 0x181   :  { %604 = vmatpush3.msra.mxu1 %v374_v38 }
 0x232   :  { %v227_v48 = vpop.f32.mrf.mxu1 }
 0x233   :  { %v784_v49 = vadd.f32 %v227_v48, %v160_v47  ;;  %v366_v47 = vrot.slane %v34_v22, %v765_v36 }
 0x234   :  { %v553_v50 = vpop.f32.mrf.mxu1 }
 0x235   :  { %231 = vadd.xlane.f32.xlu1 %v784_v49  ;;  %v233_v51 = vmul.f32 %v784_v49, %v784_v49  ;;  %v371_v50 = vrot.slane %v34_v22, %v768_v37 }
 0x239   :  { %234 = vadd.xlane.f32.xlu1 %v233_v51 }
 0x2be   :  { %v232_v6 = vpop.xlane.xlu1 %231 }
 0x2bf   :  { %v236_v7 = vmul.f32 0.0078125, %v232_v6 }
 0x2c1   :  { %v238_v9 = vmul.f32 %v236_v7, %v236_v7  ;;  %v241_v15 = vsub.f32 %v784_v49, %v236_v7 }
 0x2c2   :  { %v235_v8 = vpop.xlane.xlu1 %234 }
 0x2c3   :  { %v237_v10 = vmul.f32 0.0078125, %v235_v8 }
 0x2c5   :  { %v239_v11 = vsub.f32 %v237_v10, %v238_v9 }
 0x2c7   :  { %v240_v12 = vmax.f32 %v239_v11, 0.0 }
 0x2c9   :  { %v242_v13 = vadd.f32 1e-05, %v240_v12 }
 0x2cb   :  { %612 = vrsqrt.f32 %v242_v13 }
 0x2d8   :  { %v613_v16 = vpop.eup %612 }
 0x2d9   :  { %v244_v18 = vmul.f32 %v613_v16, %v241_v15 }
 0x2db   :  { %v249_v19 = vmul.f32 %v248_v14, %v244_v18 }
 0x2dd   :  { %v254_v20 = vadd.f32 %v253_v17, %v249_v19 }
 0x2df   :  { %v255_v21 = vmax.f32 %v254_v20, 0.0 }
 0x2e1   :  { %587 = vmatmul.mubr.f32.vlgmr.msra.gmra.mxu0 %v255_v21 }
 0x3a1   :  { %v342_v24 = vpop.f32.mrf.mxu0 }
 0x3a2   :  { %v343_v25 = vadd.f32 %v342_v24, %v275_v23 }
 0x3a3   :  { %v588_v26 = vpop.f32.mrf.mxu0 }
 0x3a4   :  { %v347_v27 = vsel %vm346_vm2, %v343_v25, 0.0  ;;  %v350_v28 = vmul.f32 %v343_v25, %v343_v25 }
 0x3a5   :  { %348 = vadd.xlane.f32.xlu0 %v347_v27 }
 0x3a6   :  { %v351_v29 = vsel %vm346_vm2, %v350_v28, 0.0 }
 0x3a7   :  { %352 = vadd.xlane.f32.xlu1 %v351_v29 }
 0x42e   :  { %v349_v39 = vpop.xlane.xlu0 %348 }
 0x42f   :  { %v354_v40 = vmul.f32 0.015625, %v349_v39 }
 0x430   :  { %v353_v41 = vpop.xlane.xlu1 %352 }
 0x431   :  { %v356_v42 = vmul.f32 %v354_v40, %v354_v40  ;;  %v355_v43 = vmul.f32 0.015625, %v353_v41  ;;  %v359_v48 = vsub.f32 %v343_v25, %v354_v40 }
 0x433   :  { %v357_v44 = vsub.f32 %v355_v43, %v356_v42 }
 0x435   :  { %v358_v45 = vmax.f32 %v357_v44, 0.0 }
 0x437   :  { %v360_v46 = vadd.f32 1e-05, %v358_v45 }
 0x439   :  { %614 = vrsqrt.f32 %v360_v46 }
 0x446   :  { %v615_v49 = vpop.eup %614 }
 0x447   :  { %v362_v51 = vmul.f32 %v615_v49, %v359_v48 }
 0x449   :  { %v367_v52 = vmul.f32 %v366_v47, %v362_v51 }
 0x44b   :  { %v372_v53 = vadd.f32 %v371_v50, %v367_v52 }
 0x44d   :  { %v373_v0 = vmax.f32 %v372_v53, 0.0 }
 0x44f   :  { %606 = vmatmul.mubr.msk.f32.vlgmr.msra.gmra.mxu1 %vm346_vm2, %v373_v0 }
 0x50f   :  { %v457_v55 = vpop.f32.mrf.mxu1 }
 0x510   :  { %v458_v56 = vadd.f32 %v467_v54, %v457_v55 }
 0x511   :  { %v607_v57 = vpop.f32.mrf.mxu1 }
 0x512   :  { %461 = vst [vmem:[%s912_s9] sm:$0xff] %v458_v56 }

</bundles_post_ra>
